<compile_context>
chip_gen: v6e
topology: v6e:2x2x1
jax: 0.10.0
libtpu: 0.0.40
codegen_flags: <defaults>
</compile_context>

<pallas_src>
import functools

import jax
import jax.numpy as jnp
from jax.experimental import pallas as pl
from jax.experimental.pallas import tpu as pltpu


def tdnn_kernel(x_ref, w_ref, b_ref, o_ref, *, context_size, dilation,
                compute_dtype):
    # x_ref: (TB, T_blk, D)  full (padded) time axis, constant over the L grid axis
    # w_ref: (C*D, O)        Linear weight transposed, compute_dtype, VMEM-resident
    # b_ref: (1, O)          f32 bias, VMEM-resident
    # o_ref: (TB, TL, O)     output time tile
    TB, _, D = x_ref.shape
    _, TL, O = o_ref.shape

    start = pl.multiple_of(pl.program_id(1) * TL, TL)

    # Build the unfolded (TB, TL, C*D) operand in VMEM: lane-concatenate the C
    # sublane-shifted taps in k-major-then-d order (matches F.unfold / w_t rows).
    taps = [x_ref[:, pl.ds(start + k * dilation, TL), :]
            for k in range(context_size)]
    xu = jnp.concatenate(taps, axis=-1).astype(compute_dtype)
    xu = xu.reshape(TB * TL, context_size * D)          # (M, K) with M = TB*TL

    # One MXU matmul with K = C*D, f32 accumulation; bias + ReLU epilogue.
    y = jnp.dot(xu, w_ref[...], preferred_element_type=jnp.float32)
    y = jnp.maximum(y + b_ref[...], 0.0)
    o_ref[...] = y.reshape(TB, TL, O).astype(o_ref.dtype)


def tdnn_forward(x, weight_t, bias, *, context_size=5, dilation=1,
                 time_tile=256, batch_tile=4,
                 compute_dtype=jnp.bfloat16, out_dtype=jnp.float32):
    """x: (B, T, D) -> (B, L, O), L = T - dilation*(context_size-1)."""
    B, T, D = x.shape
    CD, O = weight_t.shape
    assert CD == context_size * D, (CD, context_size, D)
    L = T - dilation * (context_size - 1)
    assert L >= 1, "sequence too short for the given context/dilation"

    def _round_up(a, m):
        return (a + m - 1) // m * m

    # Time tile: multiple of 8, no larger than the (rounded) problem.
    TL = min(_round_up(time_tile, 8), _round_up(L, 8))
    TB = min(batch_tile, B)
    nL = pl.cdiv(L, TL)
    nB = pl.cdiv(B, TB)
    L_pad, B_pad = nL * TL, nB * TB
    # Pad time so every in-kernel slice (start + k*dilation, TL) stays in bounds.
    T_blk = L_pad + dilation * (context_size - 1)

    if B_pad != B or T_blk != T:
        x = jnp.pad(x, ((0, B_pad - B), (0, T_blk - T), (0, 0)))

    w_c = weight_t.astype(compute_dtype)                # one-time cast, stays resident
    b_c = jnp.asarray(bias, jnp.float32).reshape(1, O)

    kernel = functools.partial(tdnn_kernel, context_size=context_size,
                               dilation=dilation, compute_dtype=compute_dtype)

    out = pl.pallas_call(
        kernel,
        out_shape=jax.ShapeDtypeStruct((B_pad, L_pad, O), out_dtype),
        grid=(nB, nL),
        in_specs=[
            # x: full (padded) time axis per batch tile, constant over the L axis.
            pl.BlockSpec((TB, T_blk, D), lambda b, l: (b, 0, 0)),
            pl.BlockSpec((CD, O), lambda b, l: (0, 0)),   # weights, VMEM-resident
            pl.BlockSpec((1, O), lambda b, l: (0, 0)),    # bias, VMEM-resident
        ],
        out_specs=pl.BlockSpec((TB, TL, O), lambda b, l: (b, l, 0)),
        compiler_params=pltpu.CompilerParams(
            dimension_semantics=("parallel", "parallel")),
    )(x, w_c, b_c)

    if B_pad != B or L_pad != L:
        out = out[:B, :L]
    return out


if __name__ == "__main__":
    # Module defaults: input_dim=23, output_dim=512, context_size=5, dilation=1.
    INPUT_DIM = 23
    OUTPUT_DIM = 512
    CONTEXT = 5
    DILATION = 1
    B, T = 2, 16

    key = jax.random.PRNGKey(0)
    kx, kw, kb = jax.random.split(key, 3)

    # nn.Linear default init scale: U(-1/sqrt(fan_in), 1/sqrt(fan_in)).
    fan_in = INPUT_DIM * CONTEXT
    bound = 1.0 / (fan_in ** 0.5)
    w_t = jax.random.uniform(kw, (fan_in, OUTPUT_DIM), jnp.float32, -bound, bound)
    bias = jax.random.uniform(kb, (OUTPUT_DIM,), jnp.float32, -bound, bound)
    x = jax.random.normal(kx, (B, T, INPUT_DIM), jnp.float32)

    out = tdnn_forward(x, w_t, bias, context_size=CONTEXT, dilation=DILATION)
    out = jax.block_until_ready(out)

    L = T - DILATION * (CONTEXT - 1)
    assert out.shape == (B, L, OUTPUT_DIM), out.shape

    # Pure-JAX references: explicit unfold (k-major-then-d, matching F.unfold)
    # + Linear + ReLU.
    x_unf = jnp.concatenate(
        [x[:, k * DILATION:k * DILATION + L, :] for k in range(CONTEXT)], axis=-1)
    ref_f32 = jnp.maximum(jnp.einsum("blf,fo->blo", x_unf, w_t) + bias, 0.0)
    ref_bf16 = jnp.maximum(
        jnp.einsum("blf,fo->blo",
                   x_unf.astype(jnp.bfloat16), w_t.astype(jnp.bfloat16),
                   preferred_element_type=jnp.float32) + bias, 0.0)

    # Kernel is exact w.r.t. the same bf16-operand / f32-accumulate math ...
    assert jnp.allclose(out, ref_bf16, atol=5e-3, rtol=5e-3), \
        float(jnp.max(jnp.abs(out - ref_bf16)))
    # ... and close to the module's full-f32 reference (bf16 operand rounding only).
    assert jnp.allclose(out, ref_f32, atol=5e-2, rtol=5e-2), \
        float(jnp.max(jnp.abs(out - ref_f32)))

    print("KERNEL_OK")
</pallas_src>

<mosaic_0001>
module attributes {stable_mosaic.version = 11 : i64} {
  func.func @tdnn_kernel(%arg0: i32, %arg1: i32, %arg2: memref<2x20x23xf32, #tpu.memory_space<vmem>>, %arg3: memref<115x512xbf16, #tpu.memory_space<vmem>>, %arg4: memref<1x512xf32, #tpu.memory_space<vmem>>, %arg5: memref<2x16x512xf32, #tpu.memory_space<vmem>>) attributes {dimension_semantics = [#tpu.dimension_semantics<parallel>, #tpu.dimension_semantics<parallel>], iteration_bounds = array<i64: 1, 1>, scalar_prefetch = 0 : i64, scratch_operands = 0 : i64, tpu.core_type = #tpu.core_type<tc>, window_params = [{transform_indices = @transform_0, window_bounds = array<i64: 2, 20, 23>}, {pipeline_mode = #tpu.pipeline_mode<synchronous>, transform_indices = @transform_1, window_bounds = array<i64: 115, 512>}, {pipeline_mode = #tpu.pipeline_mode<synchronous>, transform_indices = @transform_2, window_bounds = array<i64: 1, 512>}, {transform_indices = @transform_3, window_bounds = array<i64: 2, 16, 512>}]} {
    %c16_i32 = arith.constant 16 : i32
    %0 = arith.muli %arg1, %c16_i32 : i32
    %1 = tpu.assume_multiple %0, 16 : i32
    %c0_i32 = arith.constant 0 : i32
    %2 = arith.addi %1, %c0_i32 : i32
    %c0 = arith.constant 0 : index
    %3 = arith.index_cast %2 : i32 to index
    %c0_0 = arith.constant 0 : index
    %4 = vector.load %arg2[%c0, %3, %c0_0] : memref<2x20x23xf32, #tpu.memory_space<vmem>>, vector<2x16x23xf32>
    %c1_i32 = arith.constant 1 : i32
    %5 = arith.addi %1, %c1_i32 : i32
    %c0_1 = arith.constant 0 : index
    %6 = arith.index_cast %5 : i32 to index
    %c0_2 = arith.constant 0 : index
    %7 = vector.load %arg2[%c0_1, %6, %c0_2] : memref<2x20x23xf32, #tpu.memory_space<vmem>>, vector<2x16x23xf32>
    %c2_i32 = arith.constant 2 : i32
    %8 = arith.addi %1, %c2_i32 : i32
    %c0_3 = arith.constant 0 : index
    %9 = arith.index_cast %8 : i32 to index
    %c0_4 = arith.constant 0 : index
    %10 = vector.load %arg2[%c0_3, %9, %c0_4] : memref<2x20x23xf32, #tpu.memory_space<vmem>>, vector<2x16x23xf32>
    %c3_i32 = arith.constant 3 : i32
    %11 = arith.addi %1, %c3_i32 : i32
    %c0_5 = arith.constant 0 : index
    %12 = arith.index_cast %11 : i32 to index
    %c0_6 = arith.constant 0 : index
    %13 = vector.load %arg2[%c0_5, %12, %c0_6] : memref<2x20x23xf32, #tpu.memory_space<vmem>>, vector<2x16x23xf32>
    %c4_i32 = arith.constant 4 : i32
    %14 = arith.addi %1, %c4_i32 : i32
    %c0_7 = arith.constant 0 : index
    %15 = arith.index_cast %14 : i32 to index
    %c0_8 = arith.constant 0 : index
    %16 = vector.load %arg2[%c0_7, %15, %c0_8] : memref<2x20x23xf32, #tpu.memory_space<vmem>>, vector<2x16x23xf32>
    %17 = tpu.concatenate %4, %7, %10, %13, %16 in 2 : vector<2x16x23xf32>, vector<2x16x23xf32>, vector<2x16x23xf32>, vector<2x16x23xf32>, vector<2x16x23xf32> -> vector<2x16x115xf32>
    %18 = arith.truncf %17 : vector<2x16x115xf32> to vector<2x16x115xbf16>
    %19 = vector.shape_cast %18 : vector<2x16x115xbf16> to vector<32x115xbf16>
    %c0_9 = arith.constant 0 : index
    %c0_10 = arith.constant 0 : index
    %20 = vector.load %arg3[%c0_9, %c0_10] : memref<115x512xbf16, #tpu.memory_space<vmem>>, vector<115x512xbf16>
    %cst = arith.constant dense<0.000000e+00> : vector<32x512xf32>
    %21 = tpu.matmul %19, %20, %cst {dimension_numbers = #tpu.dot_dimension_numbers<[1], [0], [0], [1], [0, 0, 1, 1], [], []>} : vector<32x115xbf16>, vector<115x512xbf16>, vector<32x512xf32> -> vector<32x512xf32>
    %c0_11 = arith.constant 0 : index
    %c0_12 = arith.constant 0 : index
    %22 = vector.load %arg4[%c0_11, %c0_12] : memref<1x512xf32, #tpu.memory_space<vmem>>, vector<1x512xf32>
    %23 = vector.broadcast %22 : vector<1x512xf32> to vector<32x512xf32>
    %24 = arith.addf %21, %23 : vector<32x512xf32>
    %cst_13 = arith.constant 0.000000e+00 : f32
    %25 = vector.broadcast %cst_13 : f32 to vector<32x512xf32>
    %26 = arith.maximumf %24, %25 : vector<32x512xf32>
    %27 = vector.shape_cast %26 : vector<32x512xf32> to vector<2x16x512xf32>
    %c0_14 = arith.constant 0 : index
    %c0_15 = arith.constant 0 : index
    %c0_16 = arith.constant 0 : index
    %28 = vector.load %arg5[%c0_14, %c0_15, %c0_16] : memref<2x16x512xf32, #tpu.memory_space<vmem>>, vector<2x16x512xf32>
    tpu.vector_store %arg5[%c0_14, %c0_15, %c0_16], %27 {strides = array<i32>} : memref<2x16x512xf32, #tpu.memory_space<vmem>>, vector<2x16x512xf32>,
    return
  }
  func.func @transform_0(%arg0: i32, %arg1: i32) -> (i32, i32, i32) {
    %c0_i32 = arith.constant 0 : i32
    %c0_i32_0 = arith.constant 0 : i32
    %c0_i32_1 = arith.constant 0 : i32
    return %arg0, %c0_i32, %c0_i32_0 : i32, i32, i32
  }
  func.func @transform_1(%arg0: i32, %arg1: i32) -> (i32, i32) {
    %c0_i32 = arith.constant 0 : i32
    %c0_i32_0 = arith.constant 0 : i32
    %c0_i32_1 = arith.constant 0 : i32
    return %c0_i32, %c0_i32_0 : i32, i32
  }
  func.func @transform_2(%arg0: i32, %arg1: i32) -> (i32, i32) {
    %c0_i32 = arith.constant 0 : i32
    %c0_i32_0 = arith.constant 0 : i32
    %c0_i32_1 = arith.constant 0 : i32
    return %c0_i32, %c0_i32_0 : i32, i32
  }
  func.func @transform_3(%arg0: i32, %arg1: i32) -> (i32, i32, i32) {
    %c0_i32 = arith.constant 0 : i32
    %c0_i32_0 = arith.constant 0 : i32
    return %arg0, %arg1, %c0_i32 : i32, i32, i32
  }
}

</mosaic_0001>

<bundles_post_ra>
// kernel: tpu_custom_call.1
= control target key start
LH: loop header
LB: loop body
LE: loop exit
PB: predicated region body
PF: predicated region fallthrough
CT: control target
= control target key end

     0   :  { %8 = vsyncpa [#allocation3], 0  ;;  %s854_s0 = inlined_call_operand.vmem [shape: f32[2,20,23], index: 0, kind: input, shape index: {}]   ;;  %s855_s1 = inlined_call_operand.hbm [shape: bf16[115,512], index: 1, kind: input, shape index: {}]   ;;  %s856_s2 = inlined_call_operand.vmem [shape: f32[1,512], index: 2, kind: input, shape index: {}]   ;;  %s857_s3 = inlined_call_operand.hbm [shape: f32[2,16,512], index: 3, kind: output, shape index: {}]  }
   0x1   :  { %9 = vsyncpa [#allocation4], 0  ;;  %s724_s12 = smov [#allocation2]  }
   0x2   :  { %s17_s13 = sshll.u32 %s724_s12, 4  ;;  %s18_s13 = int_to_ptr.vmem [resolvable:$true] %s17_s13 }
   0x3   :  { %s688_s14 = scalar_lea.vmem %s18_s13, 3840  ;;  %p693_p1 = scmp.lt.s32.totalorder %s18_s13, %s18_s13 }
   0x4   :  { %p689_p0 = scmp.ne.s32.totalorder %s18_s13, %s688_s14  ;;  %p694_p2 = scmp.lt.s32.totalorder %s688_s14, %s688_s14 }
   0x6   :  { %p695_p3 = por %p694_p2, %p693_p1 }
   0x8   :  { %p696_p4 = pnand %p695_p3, %p689_p0 }
   0xa   :  { %699 = shalt.err (!%p696_p4)
}
   0xb   :  { %s725_s15 = smov 256   ;;  %s726_s16 = smov 16  }
   0xc   :  { %23 = dma.hbm_to_vmem [thread:$0]  %s855_s1, 3840, %s18_s13, [#allocation3], %s725_s15, %s725_s15, %s726_s16  }
   0xd   :  { %720 = dma.done.wait [#allocation3], 3840  }
   0xe   :  { %721 = vsyncadd [#allocation3], 4294963456  ;;  %vm355_vm0 = vcmask 1040384   ;;  %v530_v0 = vld [vmem:[%s854_s0 + $0x1] sm:$0xff]  ;;  %v531_v1 = vld [vmem:[%s854_s0 + $0x9] sm:$0xff]  ;;  %v727_v3 = vmov 0  }
   0xf   :  { %v538_v2 = vld [vmem:[%s854_s0 + $0x3] sm:$0xff]  ;;  %403 = vmatprep.mubr.bf16.mxu0 %v727_v3  ;;  %456 = vmatprep.mubr.bf16.mxu1 %v727_v3  ;;  %v594_v4 = vpack.i.bf16 %v531_v1, %v530_v0  ;;  %v539_v5 = vld [vmem:[%s854_s0 + $0xb] sm:$0xff]  ;;  %vm356_vm1 = vcmask 1041408   ;;  %v728_v11 = vmov 65535   ;;  %s729_s7 = smov 23   ;;  %s730_s8 = smov 69  }
  0x10   :  { %v534_v6 = vld [vmem:[%s854_s0 + $0x2] sm:$0xff]  ;;  %v535_v7 = vld [vmem:[%s854_s0 + $0xa] sm:$0xff]  ;;  %v604_v8 = vpack.i.bf16 %v539_v5, %v538_v2  ;;  %v357_v12 = vsel %vm355_vm0, 4294967295, %v728_v11  ;;  %v532_v15 = vld [vmem:[%s854_s0 + $0x19] sm:$0xff]  ;;  %s731_s21 = smov 46   ;;  %s732_s24 = smov 92  }
  0x11   :  { %v542_v9 = vld [vmem:[%s854_s0 + $0x4] sm:$0xff]  ;;  %v543_v10 = vld [vmem:[%s854_s0 + $0xc] sm:$0xff]  ;;  %595 = vrot.lane.b32.xlu0 %v594_v4, %s729_s7  ;;  %v599_v13 = vpack.i.bf16 %v535_v7, %v534_v6  ;;  %v536_v17 = vld [vmem:[%s854_s0 + $0x1a] sm:$0xff]  ;;  %v358_v20 = vsel %vm356_vm1, %v357_v12, 0  ;;  %vm124_vm2 = vcmask 187392   ;;  %vm129_vm3 = vcmask 375808  }
  0x12   :  { %605 = vrot.lane.b32.xlu1 %v604_v8, %s730_s8  ;;  %v609_v14 = vpack.i.bf16 %v543_v10, %v542_v9  ;;  %v533_v16 = vld [vmem:[%s854_s0 + $0x21] sm:$0xff]  ;;  %v640_v37 = vld [vmem:[#allocation2 + $0xcc] ss:$16 sps:$4 sm:$0xff]   ;;  %vm134_vm4 = vcmask 564224   ;;  %vm139_vm5 = vcmask 752640   ;;  %vm348_vm6 = vcmask 941056  }
  0x13   :  { %v537_v18 = vld [vmem:[%s854_s0 + $0x22] sm:$0xff]  ;;  %v614_v27 = vpack.i.bf16 %v533_v16, %v532_v15  ;;  %v646_v43 = vld [vmem:[#allocation2 + $0xac] ss:$16 sps:$4 sm:$0xff]  }
  0x14   :  { %v174_v19 = vld [vmem:[#allocation2 + $0xe0] sm:$0x33]  ;;  %v175_v21 = vld [vmem:[#allocation2 + $0xe8] sm:$0x33]  ;;  %v619_v30 = vpack.i.bf16 %v537_v18, %v536_v17 }
  0x15   :  { %v540_v22 = vld [vmem:[%s854_s0 + $0x1b] sm:$0xff]  ;;  %v541_v23 = vld [vmem:[%s854_s0 + $0x23] sm:$0xff]  ;;  %v575_v24 = vcombine.high %v174_v19, %v174_v19  ;;  %v577_v25 = vcombine.high %v175_v21, %v175_v21  ;;  %v574_v26 = vcombine.low %v174_v19, %v174_v19  ;;  %600 = vrot.lane.b32.xlu0 %v599_v13, %s731_s21  ;;  %v576_v29 = vcombine.low %v175_v21, %v175_v21 }
  0x16   :  { %v544_v28 = vld [vmem:[%s854_s0 + $0x1c] sm:$0xff]  ;;  %610 = vrot.lane.b32.xlu1 %v609_v14, %s732_s24  ;;  %v545_v31 = vld [vmem:[%s854_s0 + $0x24] sm:$0xff]  ;;  %v624_v38 = vpack.i.bf16 %v541_v23, %v540_v22 }
  0x17   :  { %v363_v32 = vand.u32 %v575_v24, %v358_v20  ;;  %v369_v33 = vand.u32 %v577_v25, %v358_v20  ;;  %v360_v34 = vand.u32 %v574_v26, %v358_v20  ;;  %v638_v35 = vld [vmem:[#allocation2 + $0xc4] ss:$16 sps:$4 sm:$0xff]   ;;  %v366_v36 = vand.u32 %v576_v29, %v358_v20  ;;  %v642_v39 = vld [vmem:[#allocation2 + $0xc0] ss:$16 sps:$4 sm:$0xff]   ;;  %v643_v41 = vld [vmem:[#allocation2 + $0xc8] ss:$16 sps:$4 sm:$0xff]  }
  0x18   :  { %v629_v40 = vpack.i.bf16 %v545_v31, %v544_v28  ;;  %v644_v42 = vld [vmem:[#allocation2 + $0xa4] ss:$16 sps:$4 sm:$0xff]   ;;  %v648_v44 = vld [vmem:[#allocation2 + $0xa0] ss:$16 sps:$4 sm:$0xff]   ;;  %v649_v45 = vld [vmem:[#allocation2 + $0xa8] ss:$16 sps:$4 sm:$0xff]  }
  0x19   :  { %371 = vmatprep.subr.bf16.mxu0 %v363_v32  ;;  %424 = vmatprep.subr.bf16.mxu1 %v369_v33  ;;  %v650_v46 = vld [vmem:[#allocation2 + $0x84] ss:$16 sps:$4 sm:$0xff]   ;;  %v652_v47 = vld [vmem:[#allocation2 + $0x8c] ss:$16 sps:$4 sm:$0xff]   ;;  %v654_v48 = vld [vmem:[#allocation2 + $0x80] ss:$16 sps:$4 sm:$0xff]  }
  0x1a   :  { %615 = vrot.lane.b32.xlu0 %v614_v27, %s729_s7  ;;  %372 = vmatpush1.bf16.msra.mxu0 %v360_v34  ;;  %v655_v49 = vld [vmem:[#allocation2 + $0x88] ss:$16 sps:$4 sm:$0xff]   ;;  %v656_v50 = vld [vmem:[#allocation2 + $0x64] ss:$16 sps:$4 sm:$0xff]   ;;  %v658_v51 = vld [vmem:[#allocation2 + $0x6c] ss:$16 sps:$4 sm:$0xff]  }
  0x1b   :  { %620 = vrot.lane.b32.xlu1 %v619_v30, %s731_s21  ;;  %425 = vmatpush1.bf16.msra.mxu1 %v366_v36  ;;  %v660_v52 = vld [vmem:[#allocation2 + $0x60] ss:$16 sps:$4 sm:$0xff]   ;;  %v661_v53 = vld [vmem:[#allocation2 + $0x68] ss:$16 sps:$4 sm:$0xff]   ;;  %v662_v54 = vld [vmem:[#allocation2 + $0x44] ss:$16 sps:$4 sm:$0xff]  }
  0x1c   :  { %373 = vmatprep.subr.bf16.mxu0 %v638_v35  ;;  %426 = vmatprep.subr.bf16.mxu1 %v640_v37  ;;  %v664_v55 = vld [vmem:[#allocation2 + $0x4c] ss:$16 sps:$4 sm:$0xff]   ;;  %v666_v56 = vld [vmem:[#allocation2 + $0x40] ss:$16 sps:$4 sm:$0xff]   ;;  %v667_v57 = vld [vmem:[#allocation2 + $0x48] ss:$16 sps:$4 sm:$0xff]  }
  0x1d   :  { %v668_v58 = vld [vmem:[#allocation2 + $0x24] ss:$16 sps:$4 sm:$0xff]   ;;  %v670_v59 = vld [vmem:[#allocation2 + $0x2c] ss:$16 sps:$4 sm:$0xff]   ;;  %v672_v60 = vld [vmem:[#allocation2 + $0x20] ss:$16 sps:$4 sm:$0xff]  }
  0x1e   :  { %625 = vrot.lane.b32.xlu0 %v624_v38, %s730_s8  ;;  %374 = vmatpush1.bf16.msra.mxu0 %v642_v39  ;;  %v673_v61 = vld [vmem:[#allocation2 + $0x28] ss:$16 sps:$4 sm:$0xff]   ;;  %v674_v62 = vld [vmem:[#allocation2 + $0x4] ss:$16 sps:$4 sm:$0xff]   ;;  %v676_v63 = vld [vmem:[#allocation2 + $0xc] ss:$16 sps:$4 sm:$0xff]  }
  0x1f   :  { %630 = vrot.lane.b32.xlu1 %v629_v40, %s732_s24  ;;  %427 = vmatpush1.bf16.msra.mxu1 %v643_v41  ;;  %v678_v0 = vld [vmem:[#allocation2] ss:$16 sps:$4 sm:$0xff]   ;;  %v679_v1 = vld [vmem:[#allocation2 + $0x8] ss:$16 sps:$4 sm:$0xff]  }
  0x20   :  { %375 = vmatprep.subr.bf16.mxu0 %v644_v42  ;;  %428 = vmatprep.subr.bf16.mxu1 %v646_v43  ;;  %v32_v7 = vld [vmem:[%s854_s0] sm:$0xff]  ;;  %v33_v8 = vld [vmem:[%s854_s0 + $0x8] sm:$0xff]  ;;  %v34_v24 = vld [vmem:[%s854_s0 + $0x18] sm:$0xff] }
  0x21   :  { %v35_v25 = vld [vmem:[%s854_s0 + $0x20] sm:$0xff] }
  0x22   :  { %376 = vmatpush1.bf16.msra.mxu0 %v648_v44 }
  0x23   :  { %429 = vmatpush1.bf16.msra.mxu1 %v649_v45  ;;  %377 = vmatprep.subr.bf16.mxu0 %v650_v46 }
  0x24   :  { %430 = vmatprep.subr.bf16.mxu1 %v652_v47 }
  0x26   :  { %378 = vmatpush1.bf16.msra.mxu0 %v654_v48 }
  0x27   :  { %431 = vmatpush1.bf16.msra.mxu1 %v655_v49  ;;  %379 = vmatprep.subr.bf16.mxu0 %v656_v50  ;;  %v178_v49 = vlaneseq }
  0x28   :  { %432 = vmatprep.subr.bf16.mxu1 %v658_v51 }
  0x29   :  { %v179_v50 = vshrl.u32 %v178_v49, 7 }
  0x2a   :  { %380 = vmatpush1.bf16.msra.mxu0 %v660_v52 }
  0x2b   :  { %433 = vmatpush1.bf16.msra.mxu1 %v661_v53  ;;  %381 = vmatprep.subr.bf16.mxu0 %v662_v54  ;;  %v180_v51 = vsub.s32 0, %v179_v50  ;;  %v188_v52 = vsub.s32 2, %v179_v50  ;;  %v184_v53 = vsub.s32 1, %v179_v50  ;;  %v192_v54 = vsub.s32 3, %v179_v50 }
  0x2c   :  { %434 = vmatprep.subr.bf16.mxu1 %v664_v55 }
  0x2e   :  { %382 = vmatpush1.bf16.msra.mxu0 %v666_v56 }
  0x2f   :  { %435 = vmatpush1.bf16.msra.mxu1 %v667_v57  ;;  %383 = vmatprep.subr.bf16.mxu0 %v668_v58 }
  0x30   :  { %436 = vmatprep.subr.bf16.mxu1 %v670_v59 }
  0x32   :  { %384 = vmatpush1.bf16.msra.mxu0 %v672_v60 }
  0x33   :  { %437 = vmatpush1.bf16.msra.mxu1 %v673_v61  ;;  %385 = vmatprep.subr.bf16.mxu0 %v674_v62 }
  0x34   :  { %438 = vmatprep.subr.bf16.mxu1 %v676_v63 }
  0x36   :  { %386 = vmatpush1.bf16.msra.mxu0 %v678_v0 }
  0x37   :  { %439 = vmatpush1.bf16.msra.mxu1 %v679_v1 }
  0x83   :  { %v596_v2 = vpop.permute.xlu0 %595 }
  0x84   :  { %v606_v4 = vpop.permute.xlu1 %605  ;;  %v598_v5 = vunpack.i.h.bf16 %v596_v2  ;;  %v597_v6 = vunpack.i.l.bf16 %v596_v2 }
  0x85   :  { %v608_v10 = vunpack.i.h.bf16 %v606_v4  ;;  %v607_v11 = vunpack.i.l.bf16 %v606_v4 }
  0x86   :  { %v125_v15 = vsel %vm124_vm2, %v32_v7, %v597_v6  ;;  %v126_v16 = vsel %vm124_vm2, %v33_v8, %v598_v5 }
  0x87   :  { %v601_v9 = vpop.permute.xlu0 %600 }
  0x88   :  { %v603_v12 = vunpack.i.h.bf16 %v601_v9  ;;  %v602_v13 = vunpack.i.l.bf16 %v601_v9  ;;  %v611_v14 = vpop.permute.xlu1 %610 }
  0x89   :  { %v613_v17 = vunpack.i.h.bf16 %v611_v14  ;;  %v612_v18 = vunpack.i.l.bf16 %v611_v14 }
  0x8a   :  { %v130_v19 = vsel %vm129_vm3, %v125_v15, %v602_v13  ;;  %v131_v20 = vsel %vm129_vm3, %v126_v16, %v603_v12 }
  0x8b   :  { %v135_v21 = vsel %vm134_vm4, %v130_v19, %v607_v11  ;;  %v136_v22 = vsel %vm134_vm4, %v131_v20, %v608_v10 }
  0x8c   :  { %v616_v23 = vpop.permute.xlu0 %615  ;;  %v140_v26 = vsel %vm139_vm5, %v135_v21, %v612_v18  ;;  %v141_v27 = vsel %vm139_vm5, %v136_v22, %v613_v17 }
  0x8d   :  { %v618_v28 = vunpack.i.h.bf16 %v616_v23  ;;  %v617_v29 = vunpack.i.l.bf16 %v616_v23  ;;  %v621_v30 = vpop.permute.xlu1 %620  ;;  %v144_v31 = vpack.c.bf16 %v141_v27, %v140_v26 }
  0x8e   :  { %v623_v32 = vunpack.i.h.bf16 %v621_v30  ;;  %v622_v33 = vunpack.i.l.bf16 %v621_v30 }
  0x8f   :  { %v127_v34 = vsel %vm124_vm2, %v34_v24, %v617_v29  ;;  %v128_v35 = vsel %vm124_vm2, %v35_v25, %v618_v28  ;;  %578 = vmatmul.mubr.msk.bf16.vlgmr.msra.gmra.mxu0 %vm348_vm6, %v144_v31  ;;  %580 = vmatmul.mubr.msk.bf16.vlgmr.msra.gmra.mxu1 %vm348_vm6, %v144_v31 }
  0x90   :  { %v132_v36 = vsel %vm129_vm3, %v127_v34, %v622_v33  ;;  %v133_v37 = vsel %vm129_vm3, %v128_v35, %v623_v32  ;;  %v626_v38 = vpop.permute.xlu0 %625  ;;  %413 = vmatprep.mubr.bf16.mxu0 %v727_v3  ;;  %466 = vmatprep.mubr.bf16.mxu1 %v727_v3  ;;  %v176_v3 = vld [vmem:[%s856_s2] sm:$0xf]  ;;  %s733_s2 = smov [#allocation5]  }
  0x91   :  { %v628_v39 = vunpack.i.h.bf16 %v626_v38  ;;  %v627_v40 = vunpack.i.l.bf16 %v626_v38  ;;  %v631_v41 = vpop.permute.xlu1 %630  ;;  %v181_v55 = vrot.slane %v176_v3, %v180_v51  ;;  %v189_v56 = vrot.slane %v176_v3, %v188_v52  ;;  %s514_s8 = sshll.u32 %s733_s2, 4  ;;  %s515_s8 = int_to_ptr.vmem [resolvable:$true] %s514_s8 }
  0x92   :  { %v633_v42 = vunpack.i.h.bf16 %v631_v41  ;;  %v632_v43 = vunpack.i.l.bf16 %v631_v41  ;;  %v185_v57 = vrot.slane %v176_v3, %v184_v53  ;;  %v193_v58 = vrot.slane %v176_v3, %v192_v54  ;;  %s700_s9 = scalar_lea.vmem %s515_s8, 2048  ;;  %p705_p6 = scmp.lt.s32.totalorder %s515_s8, %s515_s8 }
  0x93   :  { %v137_v44 = vsel %vm134_vm4, %v132_v36, %v627_v40  ;;  %v138_v45 = vsel %vm134_vm4, %v133_v37, %v628_v39  ;;  %p701_p5 = scmp.ne.s32.totalorder %s515_s8, %s700_s9  ;;  %p706_p7 = scmp.lt.s32.totalorder %s700_s9, %s700_s9 }
  0x94   :  { %v142_v46 = vsel %vm139_vm5, %v137_v44, %v632_v43  ;;  %v143_v47 = vsel %vm139_vm5, %v138_v45, %v633_v42 }
  0x95   :  { %v145_v48 = vpack.c.bf16 %v143_v47, %v142_v46  ;;  %p707_p8 = por %p706_p7, %p705_p6 }
  0x97   :  { %579 = vmatmul.mubr.msk.bf16.gmra.mxu0 %vm348_vm6, %v145_v48  ;;  %581 = vmatmul.mubr.msk.bf16.gmra.mxu1 %vm348_vm6, %v145_v48  ;;  %p708_p9 = pnand %p707_p8, %p701_p5 }
 0x14f   :  { %v405_v59 = vpop.f32.mrf.mxu0  ;;  %v458_v60 = vpop.f32.mrf.mxu1 }
 0x150   :  { %v406_v61 = vadd.f32 %v405_v59, %v181_v55  ;;  %v459_v62 = vadd.f32 %v458_v60, %v189_v56 }
 0x151   :  { %v407_v63 = vpop.f32.mrf.mxu0  ;;  %v460_v0 = vpop.f32.mrf.mxu1 }
 0x152   :  { %v477_v1 = vmax.f32 %v406_v61, 0.0  ;;  %v479_v2 = vmax.f32 %v459_v62, 0.0  ;;  %v408_v4 = vadd.f32 %v407_v63, %v185_v57  ;;  %v461_v5 = vadd.f32 %v460_v0, %v193_v58 }
 0x153   :  { %v409_v6 = vpop.f32.mrf.mxu0  ;;  %v462_v7 = vpop.f32.mrf.mxu1 }
 0x154   :  { %493 = vst [vmem:[#allocation5] sm:$0xff] %v477_v1  ;;  %495 = vst [vmem:[#allocation5 + $0x10] sm:$0xff] %v479_v2  ;;  %v478_v8 = vmax.f32 %v408_v4, 0.0  ;;  %v480_v9 = vmax.f32 %v461_v5, 0.0  ;;  %v410_v10 = vadd.f32 %v409_v6, %v181_v55  ;;  %v463_v11 = vadd.f32 %v462_v7, %v189_v56 }
 0x155   :  { %v411_v12 = vpop.f32.mrf.mxu0  ;;  %v464_v13 = vpop.f32.mrf.mxu1 }
 0x156   :  { %494 = vst [vmem:[#allocation5 + $0x8] sm:$0xff] %v478_v8  ;;  %496 = vst [vmem:[#allocation5 + $0x18] sm:$0xff] %v480_v9  ;;  %v481_v14 = vmax.f32 %v410_v10, 0.0  ;;  %v483_v15 = vmax.f32 %v463_v11, 0.0  ;;  %v412_v16 = vadd.f32 %v411_v12, %v185_v57  ;;  %v465_v17 = vadd.f32 %v464_v13, %v193_v58 }
 0x157   :  { %v415_v18 = vpop.f32.mrf.mxu0  ;;  %v468_v19 = vpop.f32.mrf.mxu1 }
 0x158   :  { %497 = vst [vmem:[#allocation5 + $0x20] sm:$0xff] %v481_v14  ;;  %499 = vst [vmem:[#allocation5 + $0x30] sm:$0xff] %v483_v15  ;;  %v482_v20 = vmax.f32 %v412_v16, 0.0  ;;  %v484_v21 = vmax.f32 %v465_v17, 0.0  ;;  %v416_v22 = vadd.f32 %v415_v18, %v181_v55  ;;  %v469_v23 = vadd.f32 %v468_v19, %v189_v56 }
 0x159   :  { %v417_v24 = vpop.f32.mrf.mxu0  ;;  %v470_v25 = vpop.f32.mrf.mxu1 }
 0x15a   :  { %498 = vst [vmem:[#allocation5 + $0x28] sm:$0xff] %v482_v20  ;;  %500 = vst [vmem:[#allocation5 + $0x38] sm:$0xff] %v484_v21  ;;  %v485_v26 = vmax.f32 %v416_v22, 0.0  ;;  %v487_v27 = vmax.f32 %v469_v23, 0.0  ;;  %v418_v28 = vadd.f32 %v417_v24, %v185_v57  ;;  %v471_v29 = vadd.f32 %v470_v25, %v193_v58 }
 0x15b   :  { %v419_v30 = vpop.f32.mrf.mxu0  ;;  %v472_v31 = vpop.f32.mrf.mxu1 }
 0x15c   :  { %501 = vst [vmem:[#allocation5 + $0x40] sm:$0xff] %v485_v26  ;;  %503 = vst [vmem:[#allocation5 + $0x50] sm:$0xff] %v487_v27  ;;  %v486_v32 = vmax.f32 %v418_v28, 0.0  ;;  %v488_v33 = vmax.f32 %v471_v29, 0.0  ;;  %v420_v34 = vadd.f32 %v419_v30, %v181_v55  ;;  %v473_v35 = vadd.f32 %v472_v31, %v189_v56 }
 0x15d   :  { %v421_v36 = vpop.f32.mrf.mxu0  ;;  %v474_v37 = vpop.f32.mrf.mxu1 }
 0x15e   :  { %502 = vst [vmem:[#allocation5 + $0x48] sm:$0xff] %v486_v32  ;;  %504 = vst [vmem:[#allocation5 + $0x58] sm:$0xff] %v488_v33  ;;  %v489_v38 = vmax.f32 %v420_v34, 0.0  ;;  %v491_v39 = vmax.f32 %v473_v35, 0.0  ;;  %v422_v40 = vadd.f32 %v421_v36, %v185_v57  ;;  %v475_v41 = vadd.f32 %v474_v37, %v193_v58 }
 0x160   :  { %505 = vst [vmem:[#allocation5 + $0x60] sm:$0xff] %v489_v38  ;;  %507 = vst [vmem:[#allocation5 + $0x70] sm:$0xff] %v491_v39  ;;  %v490_v42 = vmax.f32 %v422_v40, 0.0  ;;  %v492_v43 = vmax.f32 %v475_v41, 0.0 }
 0x162   :  { %506 = vst [vmem:[#allocation5 + $0x68] sm:$0xff] %v490_v42  ;;  %508 = vst [vmem:[#allocation5 + $0x78] sm:$0xff] %v492_v43 }
 0x163   :  { %711 = shalt.err (!%p708_p9)
}
 0x164   :  { %s734_s10 = smov 512   ;;  %s735_s11 = smov 32  }
 0x165   :  { %520 = dma.vmem_to_hbm [thread:$0]  %s515_s8, 2048, %s857_s3, [#allocation4], %s734_s10, %s734_s10, %s735_s11  }
 0x166   :  { %722 = dma.done.wait [#allocation4], 2048  }
 0x167   :  { %723 = vsyncadd [#allocation4], 4294965248 }
 0x168   :  { %524 = vsyncpa [#allocation3], 1 }
 0x169   :  { %525 = vsyncpa [#allocation4], 1 }

</bundles_post_ra>
